<compile_context>
chip_gen: v7x
topology: tpu7x:2x2x1
jax: 0.10.0
libtpu: 0.0.40
codegen_flags: <defaults>
</compile_context>

<pallas_src>
import functools

import jax
import jax.numpy as jnp
from jax.experimental import pallas as pl
from jax.experimental.pallas import tpu as pltpu

EPS = 1e-5


# ----------------------------- fused Pallas kernel ---------------------------

def _fused_kernel(x_ref, t1_ref, abd_ref, t2_ref, pnorm_ref, vecs_ref, o_ref, *, H):
    """All activations are (rows=N*H, lanes=W*C) lane-dense f32 tiles.

    x_ref    : (N*H, W*Cin)    lane-dense input
    t1_ref   : (3, W*Cin, W*Cout)   banded 3x3-conv weights, one per kh
    abd_ref  : (W*Cout, W*Cout)     block-diagonal attention 1x1 weight
    t2_ref   : (3, W*Cout, W*Cout)  banded composite depthwise∘pointwise weights
    pnorm_ref: (W*Cout, W*Cout)     per-channel group-average matrix (/ N*H*W)
    vecs_ref : (8, W*Cout)          packed per-lane vectors:
               [b_attn, bn1_g, bn1_b, b_dwpw, bn2_g, bn2_b, 0, 0]
    o_ref    : (N*H, W*Cout)        lane-dense output
    """
    f32 = jnp.float32
    M = x_ref.shape[0]

    # per-row h index (rows are (n, h) pairs stacked image after image)
    h_idx = jax.lax.broadcasted_iota(jnp.int32, (M, 1), 0) % H
    not_top = h_idx != 0
    not_bot = h_idx != (H - 1)

    def vshift(z, dh):
        # result[r] = z[r + dh]; zero where h + dh leaves the image (also kills
        # rows that would leak across the batch-image boundary).
        rolled = jnp.roll(z, shift=-dh, axis=0)
        mask = not_bot if dh > 0 else not_top
        return jnp.where(mask, rolled, 0.0)

    def conv3(z, t_ref):
        # 3x3 conv as 3 accumulated MXU matmuls against banded weights.
        acc = jnp.dot(z, t_ref[1], preferred_element_type=f32)
        acc = acc + jnp.dot(vshift(z, -1), t_ref[0], preferred_element_type=f32)
        acc = acc + jnp.dot(vshift(z, +1), t_ref[2], preferred_element_type=f32)
        return acc

    pnorm = pnorm_ref[...]
    vecs = vecs_ref[...]

    def bn_relu(z, g, b):
        # two-pass batch statistics, fully lane-dense (per-channel mean/var
        # broadcast back to lanes via the group-average matmul).
        mean = jnp.dot(jnp.sum(z, axis=0, keepdims=True), pnorm,
                       preferred_element_type=f32)
        zc = z - mean
        var = jnp.dot(jnp.sum(zc * zc, axis=0, keepdims=True), pnorm,
                      preferred_element_type=f32)
        return jnp.maximum(zc * jax.lax.rsqrt(var + EPS) * g + b, 0.0)

    x = x_ref[...]

    # ---- AttentionConv2d: 3x3 conv (no bias) + sigmoid 1x1 gate ----
    y = conv3(x, t1_ref)
    att = jnp.dot(y, abd_ref[...], preferred_element_type=f32) + vecs[0:1, :]
    y = y * jax.nn.sigmoid(att)

    # ---- BatchNorm + ReLU ----
    y = bn_relu(y, vecs[1:2, :], vecs[2:3, :])

    # ---- DepthwiseSeperableConv (depthwise∘pointwise composed) + bias ----
    z = conv3(y, t2_ref) + vecs[3:4, :]

    # ---- BatchNorm + ReLU, unmasked lane-dense store ----
    o_ref[...] = bn_relu(z, vecs[4:5, :], vecs[5:6, :])


# ----------------------------- one-time weight prep --------------------------

def prepare_params(params, N, H, W):
    """Host-side, one-time expansion of the module weights into MXU-shaped
    banded / block-diagonal matrices and packed per-lane vectors."""
    Cin = params["w_conv"].shape[2]
    Cout = params["w_conv"].shape[3]
    count = float(N * H * W)

    def band(w3):  # w3: (3, 3, Ci, Co) -> (3, W*Ci, W*Co), one banded matrix per kh
        mats = []
        for kh in range(3):
            ci, co = w3.shape[2], w3.shape[3]
            t = jnp.zeros((W * ci, W * co), jnp.float32)
            for kw in range(3):
                shift_eye = jnp.eye(W, k=-(kw - 1), dtype=jnp.float32)
                t = t + jnp.kron(shift_eye, w3[kh, kw].astype(jnp.float32))
            mats.append(t)
        return jnp.stack(mats, axis=0)

    # 3x3 attention-conv weight (HWIO) -> banded form
    t1 = band(params["w_conv"])                                    # (3, W*Cin, W*Cout)

    # compose depthwise (3,3,1,Cout) with pointwise (Cout,Cout) into one 3x3 conv
    wcomp = (params["w_dw"][:, :, 0, :, None].astype(jnp.float32)
             * params["w_pw"][None, None, :, :].astype(jnp.float32))   # (3,3,Cout,Cout)
    t2 = band(wcomp)                                               # (3, W*Cout, W*Cout)

    a_bd = jnp.kron(jnp.eye(W, dtype=jnp.float32),
                    params["w_attn"].astype(jnp.float32))          # (W*Cout, W*Cout)
    p_norm = jnp.kron(jnp.ones((W, W), jnp.float32),
                      jnp.eye(Cout, dtype=jnp.float32)) / count    # (W*Cout, W*Cout)

    def tile(v):
        return jnp.tile(jnp.reshape(v, (-1,)).astype(jnp.float32), W)

    b_comp = (jnp.reshape(params["b_dw"], (-1,)) @ params["w_pw"]
              + jnp.reshape(params["b_pw"], (-1,)))
    vecs = jnp.stack([
        tile(params["b_attn"]),
        tile(params["bn1_gamma"]), tile(params["bn1_beta"]),
        tile(b_comp),
        tile(params["bn2_gamma"]), tile(params["bn2_beta"]),
        jnp.zeros((W * Cout,), jnp.float32),
        jnp.zeros((W * Cout,), jnp.float32),
    ], axis=0)                                                     # (8, W*Cout)

    return {"t1": t1, "t2": t2, "a_bd": a_bd, "p_norm": p_norm, "vecs": vecs}


# ----------------------------- wrapper ---------------------------------------

def custom_double_conv(x_nchw, prep):
    N, Cin, H, W = x_nchw.shape
    Cout = prep["a_bd"].shape[0] // W

    # NCHW -> lane-dense (N*H, W*Cin).  TODO(synk): vanishes in an NHWC pipeline.
    x2d = jnp.transpose(x_nchw.astype(jnp.float32), (0, 2, 3, 1)).reshape(N * H, W * Cin)

    out2d = pl.pallas_call(
        functools.partial(_fused_kernel, H=H),
        out_shape=jax.ShapeDtypeStruct((N * H, W * Cout), jnp.float32),
        in_specs=[pl.BlockSpec(memory_space=pltpu.MemorySpace.VMEM)] * 6,
        out_specs=pl.BlockSpec(memory_space=pltpu.MemorySpace.VMEM),
    )(x2d, prep["t1"], prep["a_bd"], prep["t2"], prep["p_norm"], prep["vecs"])

    out = out2d.reshape(N, H, W, Cout)
    return jnp.transpose(out, (0, 3, 1, 2))                       # -> NCHW


# ----------------------------- reference (pure JAX) --------------------------

def reference(x_nchw, params):
    x = jnp.transpose(x_nchw, (0, 2, 3, 1)).astype(jnp.float32)
    y = jax.lax.conv_general_dilated(
        x, params["w_conv"], (1, 1), ((1, 1), (1, 1)),
        dimension_numbers=("NHWC", "HWIO", "NHWC"))
    att = jax.nn.sigmoid(jnp.einsum("nhwc,cd->nhwd", y, params["w_attn"])
                         + params["b_attn"][0])
    y = y * att

    def bn_relu(z, g, b):
        m = jnp.mean(z, axis=(0, 1, 2), keepdims=True)
        v = jnp.mean((z - m) ** 2, axis=(0, 1, 2), keepdims=True)
        return jnp.maximum((z - m) * jax.lax.rsqrt(v + EPS) * g[0] + b[0], 0.0)

    y = bn_relu(y, params["bn1_gamma"], params["bn1_beta"])
    C = y.shape[-1]
    dw = jax.lax.conv_general_dilated(
        y, params["w_dw"], (1, 1), ((1, 1), (1, 1)),
        dimension_numbers=("NHWC", "HWIO", "NHWC"),
        feature_group_count=C) + params["b_dw"][0]
    pw = jnp.einsum("nhwc,cd->nhwd", dw, params["w_pw"]) + params["b_pw"][0]
    y = bn_relu(pw, params["bn2_gamma"], params["bn2_beta"])
    return jnp.transpose(y, (0, 3, 1, 2))


# ----------------------------- main ------------------------------------------

if __name__ == "__main__":
    N, Cin, Cout, H, W = 2, 4, 8, 16, 16

    key = jax.random.PRNGKey(0)
    ks = jax.random.split(key, 8)
    params = {
        # PyTorch (Cout, Cin, 3, 3) stored here directly as HWIO (3, 3, Cin, Cout)
        "w_conv": 0.1 * jax.random.normal(ks[0], (3, 3, Cin, Cout), jnp.float32),
        # PyTorch 1x1 (Cout, Cout, 1, 1) stored as (in, out) matmul weight
        "w_attn": 0.1 * jax.random.normal(ks[1], (Cout, Cout), jnp.float32),
        "b_attn": 0.1 * jax.random.normal(ks[2], (1, Cout), jnp.float32),
        "bn1_gamma": jnp.ones((1, Cout), jnp.float32),
        "bn1_beta": jnp.zeros((1, Cout), jnp.float32),
        # PyTorch depthwise (Cout, 1, 3, 3) stored as HWIO (3, 3, 1, Cout)
        "w_dw": 0.1 * jax.random.normal(ks[3], (3, 3, 1, Cout), jnp.float32),
        "b_dw": 0.1 * jax.random.normal(ks[4], (1, 1, Cout), jnp.float32),
        # PyTorch pointwise (Cout, Cout, 1, 1) stored as (in, out)
        "w_pw": 0.1 * jax.random.normal(ks[5], (Cout, Cout), jnp.float32),
        "b_pw": 0.1 * jax.random.normal(ks[6], (1, Cout), jnp.float32),
        "bn2_gamma": jnp.ones((1, Cout), jnp.float32),
        "bn2_beta": jnp.zeros((1, Cout), jnp.float32),
    }

    x = jax.random.normal(ks[7], (N, Cin, H, W), jnp.float32)

    # one-time host-side weight expansion (banded / block-diag matrices, packed vecs)
    prep = jax.tree_util.tree_map(jax.block_until_ready,
                                  prepare_params(params, N, H, W))

    fwd = jax.jit(custom_double_conv)
    out = jax.block_until_ready(fwd(x, prep))
    ref = jax.block_until_ready(reference(x, params))

    assert out.shape == (N, Cout, H, W), out.shape
    assert jnp.all(jnp.isfinite(out))
    assert jnp.allclose(out, ref, rtol=1e-3, atol=1e-3), \
        float(jnp.max(jnp.abs(out - ref)))

    print("KERNEL_OK")
</pallas_src>

<mosaic_0001>
module attributes {stable_mosaic.version = 11 : i64} {
  func.func @_fused_kernel(%arg0: memref<32x64xf32, #tpu.memory_space<vmem>>, %arg1: memref<3x64x128xf32, #tpu.memory_space<vmem>>, %arg2: memref<128x128xf32, #tpu.memory_space<vmem>>, %arg3: memref<3x128x128xf32, #tpu.memory_space<vmem>>, %arg4: memref<128x128xf32, #tpu.memory_space<vmem>>, %arg5: memref<8x128xf32, #tpu.memory_space<vmem>>, %arg6: memref<32x128xf32, #tpu.memory_space<vmem>>) attributes {dimension_semantics = [], scalar_prefetch = 0 : i64, scratch_operands = 0 : i64, tpu.core_type = #tpu.core_type<tc>} {
    %0 = tpu.iota {dimensions = array<i32: 0>} : vector<32x1xi32>
    %c16_i32 = arith.constant 16 : i32
    %c0_i32 = arith.constant 0 : i32
    %1 = arith.cmpi eq, %c16_i32, %c0_i32 : i32
    %c1_i32 = arith.constant 1 : i32
    %2 = arith.select %1, %c1_i32, %c16_i32 : i32
    %3 = vector.broadcast %2 : i32 to vector<32x1xi32>
    %4 = arith.remsi %0, %3 : vector<32x1xi32>
    %c0_i32_0 = arith.constant 0 : i32
    %5 = vector.broadcast %c0_i32_0 : i32 to vector<32x1xi32>
    %6 = arith.cmpi ne, %4, %5 : vector<32x1xi32>
    %c0_i32_1 = arith.constant 0 : i32
    %7 = vector.broadcast %c0_i32_1 : i32 to vector<32x1xi32>
    %8 = arith.cmpi slt, %4, %7 : vector<32x1xi32>
    %c0_i32_2 = arith.constant 0 : i32
    %9 = arith.cmpi slt, %2, %c0_i32_2 : i32
    %10 = vector.broadcast %9 : i1 to vector<32x1xi1>
    %11 = vector.broadcast %10 : vector<32x1xi1> to vector<32x1xi1>
    %12 = arith.xori %8, %11 : vector<32x1xi1>
    %13 = arith.andi %12, %6 : vector<32x1xi1>
    %14 = vector.broadcast %2 : i32 to vector<32x1xi32>
    %15 = arith.addi %4, %14 : vector<32x1xi32>
    %16 = arith.select %13, %15, %4 : vector<32x1xi1>, vector<32x1xi32>
    %c0_i32_3 = arith.constant 0 : i32
    %17 = vector.broadcast %c0_i32_3 : i32 to vector<32x1xi32>
    %18 = arith.cmpi ne, %16, %17 : vector<32x1xi32>
    %c15_i32 = arith.constant 15 : i32
    %19 = vector.broadcast %c15_i32 : i32 to vector<32x1xi32>
    %20 = arith.cmpi ne, %16, %19 : vector<32x1xi32>
    %c0 = arith.constant 0 : index
    %c0_4 = arith.constant 0 : index
    %21 = vector.load %arg4[%c0, %c0_4] : memref<128x128xf32, #tpu.memory_space<vmem>>, vector<128x128xf32>
    %c0_5 = arith.constant 0 : index
    %c0_6 = arith.constant 0 : index
    %22 = vector.load %arg5[%c0_5, %c0_6] : memref<8x128xf32, #tpu.memory_space<vmem>>, vector<8x128xf32>
    %c0_7 = arith.constant 0 : index
    %c0_8 = arith.constant 0 : index
    %23 = vector.load %arg0[%c0_7, %c0_8] : memref<32x64xf32, #tpu.memory_space<vmem>>, vector<32x64xf32>
    %c1 = arith.constant 1 : index
    %c0_9 = arith.constant 0 : index
    %c0_10 = arith.constant 0 : index
    %24 = vector.load %arg1[%c1, %c0_9, %c0_10] : memref<3x64x128xf32, #tpu.memory_space<vmem>>, vector<1x64x128xf32>
    %25 = vector.shape_cast %24 : vector<1x64x128xf32> to vector<64x128xf32>
    %cst = arith.constant dense<0.000000e+00> : vector<32x128xf32>
    %26 = tpu.matmul %23, %25, %cst {dimension_numbers = #tpu.dot_dimension_numbers<[1], [0], [0], [1], [0, 0, 1, 1], [], []>} : vector<32x64xf32>, vector<64x128xf32>, vector<32x128xf32> -> vector<32x128xf32>
    %27 = vector.extract_strided_slice %23 {offsets = [31, 0], sizes = [1, 64], strides = [1, 1]} : vector<32x64xf32> to vector<1x64xf32>
    %28 = vector.extract_strided_slice %23 {offsets = [0, 0], sizes = [31, 64], strides = [1, 1]} : vector<32x64xf32> to vector<31x64xf32>
    %29 = tpu.concatenate %27, %28 in 0 : vector<1x64xf32>, vector<31x64xf32> -> vector<32x64xf32>
    %cst_11 = arith.constant 0.000000e+00 : f32
    %30 = vector.shape_cast %18 : vector<32x1xi1> to vector<32x1xi1>
    %31 = vector.broadcast %30 : vector<32x1xi1> to vector<32x64xi1>
    %32 = vector.broadcast %cst_11 : f32 to vector<32x64xf32>
    %33 = arith.select %31, %29, %32 : vector<32x64xi1>, vector<32x64xf32>
    %c0_12 = arith.constant 0 : index
    %c0_13 = arith.constant 0 : index
    %c0_14 = arith.constant 0 : index
    %34 = vector.load %arg1[%c0_12, %c0_13, %c0_14] : memref<3x64x128xf32, #tpu.memory_space<vmem>>, vector<1x64x128xf32>
    %35 = vector.shape_cast %34 : vector<1x64x128xf32> to vector<64x128xf32>
    %cst_15 = arith.constant dense<0.000000e+00> : vector<32x128xf32>
    %36 = tpu.matmul %33, %35, %cst_15 {dimension_numbers = #tpu.dot_dimension_numbers<[1], [0], [0], [1], [0, 0, 1, 1], [], []>} : vector<32x64xf32>, vector<64x128xf32>, vector<32x128xf32> -> vector<32x128xf32>
    %37 = arith.addf %26, %36 : vector<32x128xf32>
    %38 = vector.extract_strided_slice %23 {offsets = [1, 0], sizes = [31, 64], strides = [1, 1]} : vector<32x64xf32> to vector<31x64xf32>
    %39 = vector.extract_strided_slice %23 {offsets = [0, 0], sizes = [1, 64], strides = [1, 1]} : vector<32x64xf32> to vector<1x64xf32>
    %40 = tpu.concatenate %38, %39 in 0 : vector<31x64xf32>, vector<1x64xf32> -> vector<32x64xf32>
    %cst_16 = arith.constant 0.000000e+00 : f32
    %41 = vector.shape_cast %20 : vector<32x1xi1> to vector<32x1xi1>
    %42 = vector.broadcast %41 : vector<32x1xi1> to vector<32x64xi1>
    %43 = vector.broadcast %cst_16 : f32 to vector<32x64xf32>
    %44 = arith.select %42, %40, %43 : vector<32x64xi1>, vector<32x64xf32>
    %c2 = arith.constant 2 : index
    %c0_17 = arith.constant 0 : index
    %c0_18 = arith.constant 0 : index
    %45 = vector.load %arg1[%c2, %c0_17, %c0_18] : memref<3x64x128xf32, #tpu.memory_space<vmem>>, vector<1x64x128xf32>
    %46 = vector.shape_cast %45 : vector<1x64x128xf32> to vector<64x128xf32>
    %cst_19 = arith.constant dense<0.000000e+00> : vector<32x128xf32>
    %47 = tpu.matmul %44, %46, %cst_19 {dimension_numbers = #tpu.dot_dimension_numbers<[1], [0], [0], [1], [0, 0, 1, 1], [], []>} : vector<32x64xf32>, vector<64x128xf32>, vector<32x128xf32> -> vector<32x128xf32>
    %48 = arith.addf %37, %47 : vector<32x128xf32>
    %c0_20 = arith.constant 0 : index
    %c0_21 = arith.constant 0 : index
    %49 = vector.load %arg2[%c0_20, %c0_21] : memref<128x128xf32, #tpu.memory_space<vmem>>, vector<128x128xf32>
    %cst_22 = arith.constant dense<0.000000e+00> : vector<32x128xf32>
    %50 = tpu.matmul %48, %49, %cst_22 {dimension_numbers = #tpu.dot_dimension_numbers<[1], [0], [0], [1], [0, 0, 1, 1], [], []>} : vector<32x128xf32>, vector<128x128xf32>, vector<32x128xf32> -> vector<32x128xf32>
    %51 = vector.extract_strided_slice %22 {offsets = [0, 0], sizes = [1, 128], strides = [1, 1]} : vector<8x128xf32> to vector<1x128xf32>
    %52 = vector.broadcast %51 : vector<1x128xf32> to vector<32x128xf32>
    %53 = arith.addf %50, %52 : vector<32x128xf32>
    %54 = arith.negf %53 : vector<32x128xf32>
    %55 = math.exp %54 : vector<32x128xf32>
    %cst_23 = arith.constant 1.000000e+00 : f32
    %56 = vector.broadcast %cst_23 : f32 to vector<32x128xf32>
    %57 = arith.addf %56, %55 : vector<32x128xf32>
    %58 = arith.divf %56, %57 : vector<32x128xf32>
    %59 = arith.mulf %48, %58 : vector<32x128xf32>
    %60 = vector.extract_strided_slice %22 {offsets = [1, 0], sizes = [1, 128], strides = [1, 1]} : vector<8x128xf32> to vector<1x128xf32>
    %61 = vector.extract_strided_slice %22 {offsets = [2, 0], sizes = [1, 128], strides = [1, 1]} : vector<8x128xf32> to vector<1x128xf32>
    %cst_24 = arith.constant dense<0.000000e+00> : vector<128xf32>
    %62 = vector.multi_reduction <add>, %59, %cst_24 [0] : vector<32x128xf32> to vector<128xf32>
    %63 = vector.shape_cast %62 : vector<128xf32> to vector<1x128xf32>
    %cst_25 = arith.constant dense<0.000000e+00> : vector<1x128xf32>
    %64 = tpu.matmul %63, %21, %cst_25 {dimension_numbers = #tpu.dot_dimension_numbers<[1], [0], [0], [1], [0, 0, 1, 1], [], []>} : vector<1x128xf32>, vector<128x128xf32>, vector<1x128xf32> -> vector<1x128xf32>
    %65 = vector.broadcast %64 : vector<1x128xf32> to vector<32x128xf32>
    %66 = arith.subf %59, %65 : vector<32x128xf32>
    %67 = arith.mulf %66, %66 : vector<32x128xf32>
    %cst_26 = arith.constant dense<0.000000e+00> : vector<128xf32>
    %68 = vector.multi_reduction <add>, %67, %cst_26 [0] : vector<32x128xf32> to vector<128xf32>
    %69 = vector.shape_cast %68 : vector<128xf32> to vector<1x128xf32>
    %cst_27 = arith.constant dense<0.000000e+00> : vector<1x128xf32>
    %70 = tpu.matmul %69, %21, %cst_27 {dimension_numbers = #tpu.dot_dimension_numbers<[1], [0], [0], [1], [0, 0, 1, 1], [], []>} : vector<1x128xf32>, vector<128x128xf32>, vector<1x128xf32> -> vector<1x128xf32>
    %cst_28 = arith.constant 9.99999974E-6 : f32
    %71 = vector.broadcast %cst_28 : f32 to vector<1x128xf32>
    %72 = arith.addf %70, %71 : vector<1x128xf32>
    %73 = math.rsqrt %72 : vector<1x128xf32>
    %74 = vector.broadcast %73 : vector<1x128xf32> to vector<32x128xf32>
    %75 = arith.mulf %66, %74 : vector<32x128xf32>
    %76 = vector.broadcast %60 : vector<1x128xf32> to vector<32x128xf32>
    %77 = arith.mulf %75, %76 : vector<32x128xf32>
    %78 = vector.broadcast %61 : vector<1x128xf32> to vector<32x128xf32>
    %79 = arith.addf %77, %78 : vector<32x128xf32>
    %cst_29 = arith.constant 0.000000e+00 : f32
    %80 = vector.broadcast %cst_29 : f32 to vector<32x128xf32>
    %81 = arith.maximumf %79, %80 : vector<32x128xf32>
    %c1_30 = arith.constant 1 : index
    %c0_31 = arith.constant 0 : index
    %c0_32 = arith.constant 0 : index
    %82 = vector.load %arg3[%c1_30, %c0_31, %c0_32] : memref<3x128x128xf32, #tpu.memory_space<vmem>>, vector<1x128x128xf32>
    %83 = vector.shape_cast %82 : vector<1x128x128xf32> to vector<128x128xf32>
    %cst_33 = arith.constant dense<0.000000e+00> : vector<32x128xf32>
    %84 = tpu.matmul %81, %83, %cst_33 {dimension_numbers = #tpu.dot_dimension_numbers<[1], [0], [0], [1], [0, 0, 1, 1], [], []>} : vector<32x128xf32>, vector<128x128xf32>, vector<32x128xf32> -> vector<32x128xf32>
    %85 = vector.extract_strided_slice %81 {offsets = [31, 0], sizes = [1, 128], strides = [1, 1]} : vector<32x128xf32> to vector<1x128xf32>
    %86 = vector.extract_strided_slice %81 {offsets = [0, 0], sizes = [31, 128], strides = [1, 1]} : vector<32x128xf32> to vector<31x128xf32>
    %87 = tpu.concatenate %85, %86 in 0 : vector<1x128xf32>, vector<31x128xf32> -> vector<32x128xf32>
    %cst_34 = arith.constant 0.000000e+00 : f32
    %88 = vector.shape_cast %18 : vector<32x1xi1> to vector<32x1xi1>
    %89 = vector.broadcast %88 : vector<32x1xi1> to vector<32x128xi1>
    %90 = vector.broadcast %cst_34 : f32 to vector<32x128xf32>
    %91 = arith.select %89, %87, %90 : vector<32x128xi1>, vector<32x128xf32>
    %c0_35 = arith.constant 0 : index
    %c0_36 = arith.constant 0 : index
    %c0_37 = arith.constant 0 : index
    %92 = vector.load %arg3[%c0_35, %c0_36, %c0_37] : memref<3x128x128xf32, #tpu.memory_space<vmem>>, vector<1x128x128xf32>
    %93 = vector.shape_cast %92 : vector<1x128x128xf32> to vector<128x128xf32>
    %cst_38 = arith.constant dense<0.000000e+00> : vector<32x128xf32>
    %94 = tpu.matmul %91, %93, %cst_38 {dimension_numbers = #tpu.dot_dimension_numbers<[1], [0], [0], [1], [0, 0, 1, 1], [], []>} : vector<32x128xf32>, vector<128x128xf32>, vector<32x128xf32> -> vector<32x128xf32>
    %95 = arith.addf %84, %94 : vector<32x128xf32>
    %96 = vector.extract_strided_slice %81 {offsets = [1, 0], sizes = [31, 128], strides = [1, 1]} : vector<32x128xf32> to vector<31x128xf32>
    %97 = vector.extract_strided_slice %81 {offsets = [0, 0], sizes = [1, 128], strides = [1, 1]} : vector<32x128xf32> to vector<1x128xf32>
    %98 = tpu.concatenate %96, %97 in 0 : vector<31x128xf32>, vector<1x128xf32> -> vector<32x128xf32>
    %cst_39 = arith.constant 0.000000e+00 : f32
    %99 = vector.shape_cast %20 : vector<32x1xi1> to vector<32x1xi1>
    %100 = vector.broadcast %99 : vector<32x1xi1> to vector<32x128xi1>
    %101 = vector.broadcast %cst_39 : f32 to vector<32x128xf32>
    %102 = arith.select %100, %98, %101 : vector<32x128xi1>, vector<32x128xf32>
    %c2_40 = arith.constant 2 : index
    %c0_41 = arith.constant 0 : index
    %c0_42 = arith.constant 0 : index
    %103 = vector.load %arg3[%c2_40, %c0_41, %c0_42] : memref<3x128x128xf32, #tpu.memory_space<vmem>>, vector<1x128x128xf32>
    %104 = vector.shape_cast %103 : vector<1x128x128xf32> to vector<128x128xf32>
    %cst_43 = arith.constant dense<0.000000e+00> : vector<32x128xf32>
    %105 = tpu.matmul %102, %104, %cst_43 {dimension_numbers = #tpu.dot_dimension_numbers<[1], [0], [0], [1], [0, 0, 1, 1], [], []>} : vector<32x128xf32>, vector<128x128xf32>, vector<32x128xf32> -> vector<32x128xf32>
    %106 = arith.addf %95, %105 : vector<32x128xf32>
    %107 = vector.extract_strided_slice %22 {offsets = [3, 0], sizes = [1, 128], strides = [1, 1]} : vector<8x128xf32> to vector<1x128xf32>
    %108 = vector.broadcast %107 : vector<1x128xf32> to vector<32x128xf32>
    %109 = arith.addf %106, %108 : vector<32x128xf32>
    %110 = vector.extract_strided_slice %22 {offsets = [4, 0], sizes = [1, 128], strides = [1, 1]} : vector<8x128xf32> to vector<1x128xf32>
    %111 = vector.extract_strided_slice %22 {offsets = [5, 0], sizes = [1, 128], strides = [1, 1]} : vector<8x128xf32> to vector<1x128xf32>
    %cst_44 = arith.constant dense<0.000000e+00> : vector<128xf32>
    %112 = vector.multi_reduction <add>, %109, %cst_44 [0] : vector<32x128xf32> to vector<128xf32>
    %113 = vector.shape_cast %112 : vector<128xf32> to vector<1x128xf32>
    %cst_45 = arith.constant dense<0.000000e+00> : vector<1x128xf32>
    %114 = tpu.matmul %113, %21, %cst_45 {dimension_numbers = #tpu.dot_dimension_numbers<[1], [0], [0], [1], [0, 0, 1, 1], [], []>} : vector<1x128xf32>, vector<128x128xf32>, vector<1x128xf32> -> vector<1x128xf32>
    %115 = vector.broadcast %114 : vector<1x128xf32> to vector<32x128xf32>
    %116 = arith.subf %109, %115 : vector<32x128xf32>
    %117 = arith.mulf %116, %116 : vector<32x128xf32>
    %cst_46 = arith.constant dense<0.000000e+00> : vector<128xf32>
    %118 = vector.multi_reduction <add>, %117, %cst_46 [0] : vector<32x128xf32> to vector<128xf32>
    %119 = vector.shape_cast %118 : vector<128xf32> to vector<1x128xf32>
    %cst_47 = arith.constant dense<0.000000e+00> : vector<1x128xf32>
    %120 = tpu.matmul %119, %21, %cst_47 {dimension_numbers = #tpu.dot_dimension_numbers<[1], [0], [0], [1], [0, 0, 1, 1], [], []>} : vector<1x128xf32>, vector<128x128xf32>, vector<1x128xf32> -> vector<1x128xf32>
    %cst_48 = arith.constant 9.99999974E-6 : f32
    %121 = vector.broadcast %cst_48 : f32 to vector<1x128xf32>
    %122 = arith.addf %120, %121 : vector<1x128xf32>
    %123 = math.rsqrt %122 : vector<1x128xf32>
    %124 = vector.broadcast %123 : vector<1x128xf32> to vector<32x128xf32>
    %125 = arith.mulf %116, %124 : vector<32x128xf32>
    %126 = vector.broadcast %110 : vector<1x128xf32> to vector<32x128xf32>
    %127 = arith.mulf %125, %126 : vector<32x128xf32>
    %128 = vector.broadcast %111 : vector<1x128xf32> to vector<32x128xf32>
    %129 = arith.addf %127, %128 : vector<32x128xf32>
    %cst_49 = arith.constant 0.000000e+00 : f32
    %130 = vector.broadcast %cst_49 : f32 to vector<32x128xf32>
    %131 = arith.maximumf %129, %130 : vector<32x128xf32>
    %c0_50 = arith.constant 0 : index
    %c0_51 = arith.constant 0 : index
    %132 = vector.load %arg6[%c0_50, %c0_51] : memref<32x128xf32, #tpu.memory_space<vmem>>, vector<32x128xf32>
    tpu.vector_store %arg6[%c0_50, %c0_51], %131 {strides = array<i32>} : memref<32x128xf32, #tpu.memory_space<vmem>>, vector<32x128xf32>,
    return
  }
}

</mosaic_0001>

<bundles_post_ra>
// kernel: custom_double_conv.1
= control target key start
LH: loop header
LB: loop body
LE: loop exit
PB: predicated region body
PF: predicated region fallthrough
CT: control target
= control target key end

     0   :  { %11 = vsyncpa [#allocation3], 0  ;;  %s2913_s0 = inlined_call_operand.vmem [shape: f32[32,64], index: 0, kind: input, shape index: {}]   ;;  %s2914_s1 = inlined_call_operand.hbm [shape: f32[3,64,128], index: 1, kind: input, shape index: {}]   ;;  %s2915_s2 = inlined_call_operand.vmem [shape: f32[128,128], index: 2, kind: input, shape index: {}]   ;;  %s2916_s3 = inlined_call_operand.vmem [shape: f32[3,128,128], index: 3, kind: input, shape index: {}]   ;;  %s2917_s4 = inlined_call_operand.hbm [shape: f32[128,128], index: 4, kind: input, shape index: {}]   ;;  %s2918_s5 = inlined_call_operand.vmem [shape: f32[8,128], index: 5, kind: input, shape index: {}]   ;;  %s2919_s6 = inlined_call_operand.vmem [shape: f32[32,128], index: 6, kind: output, shape index: {}]  }
   0x1   :  { %12 = vsyncpa [#allocation5], 0  ;;  %s2360_s21 = smov [#allocation2]   ;;  %s2312_s25 = scalar_lea.hbm %s2914_s1, 3072 }
   0x2   :  { %s20_s22 = sshll.u32 %s2360_s21, 4  ;;  %p2313_p0 = scmp.ne.s32.totalorder %s2914_s1, %s2312_s25  ;;  %s21_s22 = int_to_ptr.vmem [resolvable:$true] %s20_s22 }
   0x3   :  { %p2316_p1 = scmp.lt.u32.totalorder %s2312_s25, %s2914_s1 }
   0x5   :  { %p2318_p2 = pnand %p2316_p1, %p2313_p0 }
   0x7   :  { %2321 = shalt.err (!%p2318_p2)
}
   0x8   :  { %s2322_s30 = scalar_lea.vmem %s21_s22, 3072  ;;  %p2327_p4 = scmp.lt.s32.totalorder %s21_s22, %s21_s22 }
   0x9   :  { %p2323_p3 = scmp.ne.s32.totalorder %s21_s22, %s2322_s30  ;;  %p2328_p5 = scmp.lt.s32.totalorder %s2322_s30, %s2322_s30 }
   0xb   :  { %p2329_p6 = por %p2328_p5, %p2327_p4 }
   0xd   :  { %p2330_p7 = pnand %p2329_p6, %p2323_p3 }
   0xf   :  { %2333 = shalt.err (!%p2330_p7)
}
  0x10   :  { %s2361_s7 = smov 128   ;;  %s2362_s8 = smov 8  }
  0x11   :  { %26 = dma.hbm_to_vmem [thread:$0]  %s2914_s1, 3072, %s21_s22, [#allocation3], %s2361_s7, %s2361_s7, %s2362_s8  }
  0x12   :  { %s2363_s11 = smov [#allocation4]   ;;  %s2334_s15 = scalar_lea.hbm %s2917_s4, 2048 }
  0x13   :  { %s36_s12 = sshll.u32 %s2363_s11, 4  ;;  %p2335_p8 = scmp.ne.s32.totalorder %s2917_s4, %s2334_s15  ;;  %s37_s12 = int_to_ptr.vmem [resolvable:$true] %s36_s12 }
  0x14   :  { %p2338_p9 = scmp.lt.u32.totalorder %s2334_s15, %s2917_s4 }
  0x16   :  { %p2340_p10 = pnand %p2338_p9, %p2335_p8 }
  0x18   :  { %2343 = shalt.err (!%p2340_p10)
}
  0x19   :  { %s2344_s20 = scalar_lea.vmem %s37_s12, 2048  ;;  %p2349_p12 = scmp.lt.s32.totalorder %s37_s12, %s37_s12 }
  0x1a   :  { %p2345_p11 = scmp.ne.s32.totalorder %s37_s12, %s2344_s20  ;;  %p2350_p13 = scmp.lt.s32.totalorder %s2344_s20, %s2344_s20 }
  0x1c   :  { %p2351_p0 = por %p2350_p13, %p2349_p12 }
  0x1e   :  { %p2352_p1 = pnand %p2351_p0, %p2345_p11 }
  0x20   :  { %2355 = shalt.err (!%p2352_p1)
}
  0x21   :  { %42 = dma.hbm_to_vmem [thread:$0]  %s2917_s4, 2048, %s37_s12, [#allocation5], %s2361_s7, %s2361_s7, %s2362_s8  }
  0x22   :  { %2356 = dma.done.wait [#allocation3], 3072  }
  0x23   :  { %2357 = vsyncadd [#allocation3], 4294964224 }
  0x24   :  { %2358 = dma.done.wait [#allocation5], 2048  }
  0x25   :  { %2359 = vsyncadd [#allocation5], 4294965248  ;;  %v51_v0 = vlaneseq  ;;  %v172_v2 = vld [vmem:[#allocation2] sm:$0xff]  ;;  %v173_v3 = vld [vmem:[#allocation2 + $0x8] sm:$0xff]  ;;  %vm148_vm0 = vcmask 1040384   ;;  %vm180_vm2 = vcmask 523264  }
  0x26   :  { %v174_v4 = vld [vmem:[#allocation2 + $0x10] sm:$0xff]  ;;  %v1997_v6 = vpack.c.bf16 %v173_v3, %v172_v2  ;;  %v175_v7 = vld [vmem:[#allocation2 + $0x18] sm:$0xff]  ;;  %v176_v9 = vld [vmem:[#allocation2 + $0x20] sm:$0xff]  ;;  %vm371_vm4 = vcmask 1046528   ;;  %vm2365_vm7 = vmmov 0  }
  0x27   :  { %v2426_v1 = vshrl.u32 %v51_v0, 7  ;;  %v2001_v8 = vpack.c.bf16 %v175_v7, %v174_v4  ;;  %v177_v10 = vld [vmem:[#allocation2 + $0x28] sm:$0xff]  ;;  %v2432_v11 = vld [vmem:[%s2913_s0] sm:$0xff]  ;;  %v2437_v12 = vld [vmem:[%s2913_s0 + $0x18] sm:$0xff] }
  0x28   :  { %1998 = vmatprep.subr.bf16.mxu0 %v1997_v6  ;;  %v149_v13 = vrot.slane %v2432_v11, 7  ;;  %v143_v15 = vrot.slane %v2437_v12, 7  ;;  %v2005_v16 = vpack.c.bf16 %v177_v10, %v176_v9  ;;  %v178_v17 = vld [vmem:[#allocation2 + $0x30] sm:$0xff]  ;;  %v179_v18 = vld [vmem:[#allocation2 + $0x38] sm:$0xff]  ;;  %v134_v23 = vld [vmem:[#allocation2 + $0x40] sm:$0xff] }
  0x29   :  { %v60_v5 = vand.u32 15, %v2426_v1  ;;  %2000 = vmatpush3.bf16.msra.mxu0 %v1997_v6  ;;  %v54_v20 = vadd.s32 16, %v2426_v1  ;;  %v2452_v22 = vld [vmem:[%s2913_s0 + $0x10] sm:$0xff]  ;;  %v2009_v24 = vpack.c.bf16 %v179_v18, %v178_v17  ;;  %v2458_v25 = vld [vmem:[%s2913_s0 + $0x8] sm:$0xff]  ;;  %v507_v26 = vld [vmem:[%s2915_s2] sm:$0xff] }
  0x2a   :  { %2002 = vmatprep.subr.bf16.mxu0 %v2001_v8  ;;  %v159_v19 = vsel %vm148_vm0, %v143_v15, %v149_v13  ;;  %v508_v27 = vld [vmem:[%s2915_s2 + $0x8] sm:$0xff]  ;;  %v152_v30 = vrot.slane %v2452_v22, 7  ;;  %v509_v31 = vld [vmem:[%s2915_s2 + $0x10] sm:$0xff]  ;;  %v510_v32 = vld [vmem:[%s2915_s2 + $0x18] sm:$0xff]  ;;  %v150_v35 = vrot.slane %v2458_v25, 7 }
  0x2b   :  { %vm2440_vm1 = vcmp.ne.s32.totalorder %v60_v5, 0  ;;  %v135_v28 = vld [vmem:[#allocation2 + $0x48] sm:$0xff]  ;;  %v74_v29 = vand.u32 15, %v54_v20  ;;  %v2045_v33 = vpack.c.bf16 %v508_v27, %v507_v26  ;;  %v2049_v34 = vpack.c.bf16 %v510_v32, %v509_v31  ;;  %v511_v36 = vld [vmem:[%s2915_s2 + $0x20] sm:$0xff]  ;;  %v136_v39 = vld [vmem:[#allocation2 + $0x50] sm:$0xff] }
  0x2c   :  { %v168_v21 = vsel %vm2440_vm1, %v159_v19, 0.0  ;;  %v512_v37 = vld [vmem:[%s2915_s2 + $0x28] sm:$0xff]  ;;  %v2013_v38 = vpack.c.bf16 %v135_v28, %v134_v23  ;;  %v137_v40 = vld [vmem:[#allocation2 + $0x58] sm:$0xff]  ;;  %v153_v42 = vsel %vm148_vm0, %v150_v35, %v152_v30  ;;  %v151_v44 = vsel %vm148_vm0, %v149_v13, %v150_v35  ;;  %v513_v45 = vld [vmem:[%s2915_s2 + $0x30] sm:$0xff] }
  0x2d   :  { %2004 = vmatpush3.bf16.msra.mxu0 %v2001_v8  ;;  %1655 = vmatprep.mubr.msk.f32.mxu0 %vm180_vm2, %v168_v21  ;;  %vm2480_vm3 = vcmp.ne.s32.totalorder %v74_v29, 0  ;;  %v2053_v43 = vpack.c.bf16 %v512_v37, %v511_v36  ;;  %v514_v46 = vld [vmem:[%s2915_s2 + $0x38] sm:$0xff]  ;;  %v2017_v47 = vpack.c.bf16 %v137_v40, %v136_v39  ;;  %v138_v49 = vld [vmem:[#allocation2 + $0x60] sm:$0xff]  ;;  %v139_v50 = vld [vmem:[#allocation2 + $0x68] sm:$0xff]  ;;  %v154_v52 = vsel %vm148_vm0, %v152_v30, %v143_v15 }
  0x2e   :  { %2006 = vmatprep.subr.bf16.mxu0 %v2005_v16  ;;  %2046 = vmatprep.subr.bf16.mxu1 %v2045_v33  ;;  %v170_v48 = vsel %vm2480_vm3, %v153_v42, 0.0  ;;  %v2057_v51 = vpack.c.bf16 %v514_v46, %v513_v45  ;;  %v515_v53 = vld [vmem:[%s2915_s2 + $0x40] sm:$0xff]  ;;  %v516_v54 = vld [vmem:[%s2915_s2 + $0x48] sm:$0xff]  ;;  %v2021_v55 = vpack.c.bf16 %v139_v50, %v138_v49  ;;  %v140_v56 = vld [vmem:[#allocation2 + $0x70] sm:$0xff]  ;;  %v372_v13 = vrot.slane %v2432_v11, 1 }
  0x2f   :  { %2048 = vmatpush3.bf16.msra.mxu1 %v2045_v33  ;;  %v141_v57 = vld [vmem:[#allocation2 + $0x78] sm:$0xff]  ;;  %v2061_v58 = vpack.c.bf16 %v516_v54, %v515_v53  ;;  %v517_v59 = vld [vmem:[%s2915_s2 + $0x50] sm:$0xff]  ;;  %v398_v62 = vld [vmem:[#allocation2 + $0x80] sm:$0xff]  ;;  %v373_v15 = vrot.slane %v2458_v25, 1  ;;  %v55_v27 = vadd.s32 24, %v2426_v1  ;;  %v377_v30 = vrot.slane %v2437_v12, 1 }
  0x30   :  { %2050 = vmatprep.subr.bf16.mxu1 %v2049_v34  ;;  %v518_v60 = vld [vmem:[%s2915_s2 + $0x58] sm:$0xff]  ;;  %v2025_v61 = vpack.c.bf16 %v141_v57, %v140_v56  ;;  %v399_v63 = vld [vmem:[#allocation2 + $0x88] sm:$0xff]  ;;  %v519_v2 = vld [vmem:[%s2915_s2 + $0x60] sm:$0xff] }
  0x31   :  { %2008 = vmatpush3.bf16.msra.mxu0 %v2005_v16  ;;  %v2065_v0 = vpack.c.bf16 %v518_v60, %v517_v59  ;;  %v520_v3 = vld [vmem:[%s2915_s2 + $0x68] sm:$0xff]  ;;  %v2029_v4 = vpack.c.bf16 %v399_v63, %v398_v62  ;;  %v400_v5 = vld [vmem:[#allocation2 + $0x90] sm:$0xff]  ;;  %v401_v6 = vld [vmem:[#allocation2 + $0x98] sm:$0xff]  ;;  %v374_v20 = vsel %vm371_vm4, %v372_v13, %v373_v15  ;;  %v81_v31 = vand.u32 15, %v55_v27 }
  0x32   :  { %2010 = vmatprep.subr.bf16.mxu0 %v2009_v24  ;;  %v2069_v7 = vpack.c.bf16 %v520_v3, %v519_v2  ;;  %v521_v8 = vld [vmem:[%s2915_s2 + $0x70] sm:$0xff]  ;;  %v522_v9 = vld [vmem:[%s2915_s2 + $0x78] sm:$0xff]  ;;  %v2033_v10 = vpack.c.bf16 %v401_v6, %v400_v5  ;;  %v402_v16 = vld [vmem:[#allocation2 + $0xa0] sm:$0xff]  ;;  %v2366_v59 = vmov 0.0   ;;  %v2622_v3 = vsub.s32 0, %v2426_v1 }
  0x33   :  { %2052 = vmatpush3.bf16.msra.mxu1 %v2049_v34  ;;  %v403_v17 = vld [vmem:[#allocation2 + $0xa8] sm:$0xff]  ;;  %v2073_v18 = vpack.c.bf16 %v522_v9, %v521_v8  ;;  %v404_v21 = vld [vmem:[#allocation2 + $0xb0] sm:$0xff]  ;;  %v405_v23 = vld [vmem:[#allocation2 + $0xb8] sm:$0xff]  ;;  %vm2546_vm6 = vcmp.ne.s32.totalorder %v81_v31, 15  ;;  %v384_v34 = vsel %vm371_vm4, %v377_v30, %v372_v13 }
  0x34   :  { %2054 = vmatprep.subr.bf16.mxu1 %v2053_v43  ;;  %v2037_v19 = vpack.c.bf16 %v403_v17, %v402_v16  ;;  %v112_v39 = vld [vmem:[#allocation4] sm:$0xff]  ;;  %v113_v40 = vld [vmem:[#allocation4 + $0x8] sm:$0xff]  ;;  %v115_v45 = vld [vmem:[#allocation4 + $0x18] sm:$0xff] }
  0x35   :  { %2012 = vmatpush3.bf16.msra.mxu0 %v2009_v24  ;;  %v375_v24 = vrot.slane %v2452_v22, 1  ;;  %v2568_v42 = vpack.c.bf16 %v113_v40, %v112_v39  ;;  %v118_v50 = vld [vmem:[#allocation4 + $0x30] sm:$0xff]  ;;  %v120_v53 = vld [vmem:[#allocation4 + $0x40] sm:$0xff]  ;;  %v121_v54 = vld [vmem:[#allocation4 + $0x48] sm:$0xff] }
  0x36   :  { %2014 = vmatprep.subr.bf16.mxu0 %v2013_v38  ;;  %v122_v56 = vld [vmem:[#allocation4 + $0x50] sm:$0xff]  ;;  %v123_v57 = vld [vmem:[#allocation4 + $0x58] sm:$0xff]  ;;  %v124_v60 = vld [vmem:[#allocation4 + $0x60] sm:$0xff] }
  0x37   :  { %2056 = vmatpush3.bf16.msra.mxu1 %v2053_v43  ;;  %v376_v29 = vsel %vm371_vm4, %v373_v15, %v375_v24  ;;  %v378_v32 = vsel %vm371_vm4, %v375_v24, %v377_v30  ;;  %v2364_v43 = vmov 0.0|0.0   ;;  %v126_v63 = vld [vmem:[#allocation4 + $0x70] sm:$0xff]  ;;  %v1427_v41 = vld [vmem:[%s2916_s3 + $0xc0] sm:$0xff] }
  0x38   :  { %1656 = vmatmul.mubr.msk.f32.vlgmr.msra.gmra.mrb[0].mxu0 %vm180_vm2, %v151_v44  ;;  %2058 = vmatprep.subr.bf16.mxu1 %v2057_v51  ;;  %v114_v44 = vld [vmem:[#allocation4 + $0x10] sm:$0xff] }
  0x39   :  { %2016 = vmatpush3.bf16.msra.mxu0 %v2013_v38  ;;  %1658 = vmatprep.mubr.msk.f32.mxu0 %vm180_vm2, %v170_v48  ;;  %v2576_v46 = vpack.c.bf16 %v115_v45, %v114_v44  ;;  %v117_v48 = vld [vmem:[#allocation4 + $0x28] sm:$0xff] }
  0x3a   :  { %2018 = vmatprep.subr.bf16.mxu0 %v2017_v47 }
  0x3b   :  { %2060 = vmatpush3.bf16.msra.mxu1 %v2057_v51  ;;  %v119_v51 = vld [vmem:[#allocation4 + $0x38] sm:$0xff] }
  0x3c   :  { %1659 = vmatmul.mubr.msk.f32.gmra.mrb[2].mxu0 %vm180_vm2, %v154_v52  ;;  %2062 = vmatprep.subr.bf16.mxu1 %v2061_v58  ;;  %v2588_v52 = vpack.c.bf16 %v119_v51, %v118_v50 }
  0x3d   :  { %2020 = vmatpush3.bf16.msra.mxu0 %v2017_v47  ;;  %1677 = vmatprep.mubr.msk.f32.mxu0 %vm180_vm2, %v2432_v11  ;;  %v53_v11 = vadd.s32 8, %v2426_v1  ;;  %v116_v47 = vld [vmem:[#allocation4 + $0x20] sm:$0xff] }
  0x3e   :  { %2022 = vmatprep.subr.bf16.mxu0 %v2021_v55  ;;  %v2582_v49 = vpack.c.bf16 %v117_v48, %v116_v47 }
  0x3f   :  { %2064 = vmatpush3.bf16.msra.mxu1 %v2061_v58  ;;  %v67_v26 = vand.u32 15, %v53_v11  ;;  %v2597_v58 = vpack.c.bf16 %v123_v57, %v122_v56  ;;  %v880_v57 = vld [vmem:[%s2916_s3 + $0x18] sm:$0xff] }
  0x40   :  { %2066 = vmatprep.subr.bf16.mxu1 %v2065_v0 }
  0x41   :  { %2024 = vmatpush3.bf16.msra.mxu0 %v2021_v55  ;;  %vm2537_vm5 = vcmp.ne.s32.totalorder %v67_v26, 15  ;;  %v2594_v55 = vpack.c.bf16 %v121_v54, %v120_v53 }
  0x42   :  { %2026 = vmatprep.subr.bf16.mxu0 %v2025_v61 }
  0x43   :  { %2068 = vmatpush3.bf16.msra.mxu1 %v2065_v0  ;;  %v127_v0 = vld [vmem:[#allocation4 + $0x78] sm:$0xff] }
  0x44   :  { %2070 = vmatprep.subr.bf16.mxu1 %v2069_v7  ;;  %v2613_v2 = vpack.c.bf16 %v127_v0, %v126_v63 }
  0x45   :  { %2028 = vmatpush3.bf16.msra.mxu0 %v2025_v61  ;;  %v125_v61 = vld [vmem:[#allocation4 + $0x68] sm:$0xff] }
  0x46   :  { %2030 = vmatprep.subr.bf16.mxu0 %v2029_v4  ;;  %v2607_v62 = vpack.c.bf16 %v125_v61, %v124_v60 }
  0x47   :  { %2072 = vmatpush3.bf16.msra.mxu1 %v2069_v7 }
  0x48   :  { %1678 = vmatmul.mubr.msk.f32.vlgmr.msra.gmra.mrb[0].mxu0 %vm180_vm2, %v2458_v25  ;;  %2074 = vmatprep.subr.bf16.mxu1 %v2073_v18  ;;  %v2041_v25 = vpack.c.bf16 %v405_v23, %v404_v21 }
  0x49   :  { %2032 = vmatpush3.bf16.msra.mxu0 %v2029_v4  ;;  %1680 = vmatprep.mubr.msk.f32.mxu0 %vm180_vm2, %v2452_v22  ;;  %v394_v22 = vsel %vm2537_vm5, %v376_v29, 0.0  ;;  %v2627_v4 = vld [vmem:[%s2918_s5] sm:$0xff] }
  0x4a   :  { %2034 = vmatprep.subr.bf16.mxu0 %v2033_v10  ;;  %v526_v5 = vrot.slane %v2627_v4, %v2622_v3 }
  0x4b   :  { %2076 = vmatpush3.bf16.msra.mxu1 %v2073_v18 }
  0x4c   :  { %1681 = vmatmul.mubr.msk.f32.gmra.mrb[2].mxu0 %vm180_vm2, %v2437_v12  ;;  %v396_v12 = vsel %vm2546_vm6, %v384_v34, 0.0  ;;  %2077 = vmatprep.subr.bf16.mxu1 %v2364_v43 }
  0x4d   :  { %2036 = vmatpush3.bf16.msra.mxu0 %v2033_v10  ;;  %1699 = vmatprep.mubr.msk.f32.mxu0 %vm180_vm2, %v374_v20 }
  0x4e   :  { %2038 = vmatprep.subr.bf16.mxu0 %v2037_v19 }
  0x51   :  { %2040 = vmatpush3.bf16.msra.mxu0 %v2037_v19 }
  0x52   :  { %2042 = vmatprep.subr.bf16.mxu0 %v2041_v25 }
  0x55   :  { %2044 = vmatpush3.bf16.msra.mxu0 %v2041_v25 }
  0x56   :  { %2101 = vmatprep.subr.bf16.mxu0 %v2364_v43 }
  0x58   :  { %1700 = vmatmul.mubr.msk.f32.vlgmr.msra.gmra.mrb[0].mxu0 %vm180_vm2, %v394_v22 }
  0x59   :  { %1702 = vmatprep.mubr.msk.f32.mxu0 %vm180_vm2, %v378_v32  ;;  %2103 = vmatpush3.bf16.msra.mxu0 %v2568_v42 }
  0x5a   :  { %2104 = vmatprep.subr.bf16.mxu0 %v2364_v43 }
  0x5c   :  { %1703 = vmatmul.mubr.msk.f32.gmra.mrb[2].mxu0 %vm180_vm2, %v396_v12 }
  0x5d   :  { %2106 = vmatpush3.bf16.msra.mxu0 %v2576_v46  ;;  %1810 = vmatprep.mubr.msk.f32.mxu0 %vm2365_vm7, %v2366_v59 }
  0x5e   :  { %2107 = vmatprep.subr.bf16.mxu0 %v2364_v43 }
  0x61   :  { %2109 = vmatpush3.bf16.msra.mxu0 %v2582_v49 }
  0x62   :  { %2110 = vmatprep.subr.bf16.mxu0 %v2364_v43 }
  0x65   :  { %2112 = vmatpush3.bf16.msra.mxu0 %v2588_v52 }
  0x66   :  { %2113 = vmatprep.subr.bf16.mxu0 %v2364_v43 }
  0x69   :  { %2115 = vmatpush3.bf16.msra.mxu0 %v2594_v55 }
  0x6a   :  { %2116 = vmatprep.subr.bf16.mxu0 %v2364_v43 }
  0x6d   :  { %2118 = vmatpush3.bf16.msra.mxu0 %v2597_v58 }
  0x6e   :  { %2119 = vmatprep.subr.bf16.mxu0 %v2364_v43 }
  0x71   :  { %2121 = vmatpush3.bf16.msra.mxu0 %v2607_v62 }
  0x72   :  { %2122 = vmatprep.subr.bf16.mxu0 %v2364_v43 }
  0x75   :  { %2124 = vmatpush3.bf16.msra.mxu0 %v2613_v2 }
  0x76   :  { %2221 = vmatprep.subr.bf16.mxu0 %v2364_v43 }
 0x12b   :  { %v2556_v35 = vpop.f32.mrb[0].mxu0 }
 0x12c   :  { %v2558_v36 = vpop.f32.mrb[1].mxu0 }
 0x12d   :  { %1737 = vmatprep.mubr.f32.mxu1 %v2558_v36 }
 0x12e   :  { %1738 = vmatmul.mubr.f32.vlgmr.msra.gmra.mrb[0].mxu1 %v2556_v35 }
 0x12f   :  { %v2562_v37 = vpop.f32.mrb[2].mxu0  ;;  %2079 = vmatpush3.bf16.msra.mxu1 %v2568_v42 }
 0x130   :  { %v2564_v38 = vpop.f32.mrb[3].mxu0  ;;  %2080 = vmatprep.subr.bf16.mxu1 %v2364_v43 }
 0x131   :  { %1740 = vmatprep.mubr.f32.mxu1 %v2564_v38 }
 0x132   :  { %1741 = vmatmul.mubr.f32.gmra.mrb[2].mxu1 %v2562_v37 }
 0x133   :  { %2082 = vmatpush3.bf16.msra.mxu1 %v2576_v46  ;;  %1775 = vmatprep.mubr.msk.f32.mxu1 %vm2365_vm7, %v2366_v59 }
 0x134   :  { %2083 = vmatprep.subr.bf16.mxu1 %v2364_v43 }
 0x137   :  { %2085 = vmatpush3.bf16.msra.mxu1 %v2582_v49 }
 0x138   :  { %2086 = vmatprep.subr.bf16.mxu1 %v2364_v43 }
 0x13b   :  { %2088 = vmatpush3.bf16.msra.mxu1 %v2588_v52 }
 0x13c   :  { %2089 = vmatprep.subr.bf16.mxu1 %v2364_v43 }
 0x13f   :  { %2091 = vmatpush3.bf16.msra.mxu1 %v2594_v55 }
 0x140   :  { %2092 = vmatprep.subr.bf16.mxu1 %v2364_v43 }
 0x143   :  { %2094 = vmatpush3.bf16.msra.mxu1 %v2597_v58 }
 0x144   :  { %2095 = vmatprep.subr.bf16.mxu1 %v2364_v43 }
 0x147   :  { %2097 = vmatpush3.bf16.msra.mxu1 %v2607_v62 }
 0x148   :  { %2098 = vmatprep.subr.bf16.mxu1 %v2364_v43 }
 0x14b   :  { %2100 = vmatpush3.bf16.msra.mxu1 %v2613_v2 }
 0x201   :  { %v1739_v6 = vpop.f32.mrb[0].mxu1 }
 0x202   :  { %v599_v7 = vadd.f32 %v1739_v6, %v526_v5  ;;  %v593_v8 = vpop.f32.mrb[1].mxu1 }
 0x203   :  { %v594_v9 = vadd.f32 %v593_v8, %v526_v5 }
 0x204   :  { %v1416_v10 = vmul.f32 -1.442695, %v599_v7 }
 0x205   :  { %v1415_v13 = vmul.f32 -1.442695, %v594_v9  ;;  %v1742_v15 = vpop.f32.mrb[2].mxu1 }
 0x206   :  { %2292 = vpow2.f32 %v1416_v10  ;;  %v609_v16 = vadd.f32 %v1742_v15, %v526_v5  ;;  %v603_v17 = vpop.f32.mrb[3].mxu1 }
 0x207   :  { %2294 = vpow2.f32 %v1415_v13  ;;  %v604_v18 = vadd.f32 %v603_v17, %v526_v5 }
 0x208   :  { %v1418_v19 = vmul.f32 -1.442695, %v609_v16 }
 0x209   :  { %v1417_v20 = vmul.f32 -1.442695, %v604_v18 }
 0x20a   :  { %2296 = vpow2.f32 %v1418_v19 }
 0x20b   :  { %2298 = vpow2.f32 %v1417_v20 }
 0x210   :  { %v2293_v11 = vpop.eup %2292 }
 0x211   :  { %v2295_v21 = vpop.eup %2294  ;;  %v625_v23 = vadd.f32 1.0, %v2293_v11 }
 0x212   :  { %v624_v24 = vadd.f32 1.0, %v2295_v21 }
 0x213   :  { %2300 = vrcp.f32 %v625_v23 }
 0x214   :  { %v2297_v25 = vpop.eup %2296  ;;  %2302 = vrcp.f32 %v624_v24 }
 0x215   :  { %v2299_v26 = vpop.eup %2298  ;;  %v627_v27 = vadd.f32 1.0, %v2297_v25  ;;  %v881_v25 = vld [vmem:[%s2916_s3 + $0x20] sm:$0xff] }
 0x216   :  { %v626_v29 = vadd.f32 1.0, %v2299_v26  ;;  %v882_v26 = vld [vmem:[%s2916_s3 + $0x28] sm:$0xff] }
 0x217   :  { %2304 = vrcp.f32 %v627_v27  ;;  %v2133_v27 = vpack.c.bf16 %v882_v26, %v881_v25 }
 0x218   :  { %2306 = vrcp.f32 %v626_v29  ;;  %v883_v29 = vld [vmem:[%s2916_s3 + $0x30] sm:$0xff] }
 0x21d   :  { %v2301_v30 = vpop.eup %2300 }
 0x21e   :  { %v2303_v31 = vpop.eup %2302  ;;  %v637_v22 = vmul.f32 %v2301_v30, %v2556_v35  ;;  %v877_v35 = vld [vmem:[%s2916_s3] sm:$0xff]  ;;  %v884_v30 = vld [vmem:[%s2916_s3 + $0x38] sm:$0xff] }
 0x21f   :  { %v636_v32 = vmul.f32 %v2303_v31, %v2558_v36  ;;  %v878_v36 = vld [vmem:[%s2916_s3 + $0x8] sm:$0xff]  ;;  %v2137_v31 = vpack.c.bf16 %v884_v30, %v883_v29 }
 0x221   :  { %v2305_v34 = vpop.eup %2304  ;;  %v640_v40 = vadd.f32 %v637_v22, %v636_v32 }
 0x222   :  { %v2307_v12 = vpop.eup %2306  ;;  %v639_v39 = vmul.f32 %v2305_v34, %v2562_v37  ;;  %v879_v37 = vld [vmem:[%s2916_s3 + $0x10] sm:$0xff] }
 0x223   :  { %v638_v44 = vmul.f32 %v2307_v12, %v2564_v38  ;;  %v2125_v38 = vpack.c.bf16 %v878_v36, %v877_v35  ;;  %v2129_v60 = vpack.c.bf16 %v880_v57, %v879_v37  ;;  %v887_v12 = vld [vmem:[%s2916_s3 + $0x50] sm:$0xff]  ;;  %v829_v57 = vsub.s32 2, %v2426_v1 }
 0x225   :  { %v641_v45 = vadd.f32 %v640_v40, %v638_v44  ;;  %2126 = vmatprep.subr.bf16.mxu1 %v2125_v38 }
 0x227   :  { %v642_v47 = vadd.f32 %v641_v45, %v639_v39  ;;  %v890_v45 = vld [vmem:[%s2916_s3 + $0x68] sm:$0xff] }
 0x229   :  { %v643_v48 = vrot.slane %v642_v47, 4 }
 0x22b   :  { %v644_v50 = vadd.f32 %v643_v48, %v642_v47  ;;  %v891_v47 = vld [vmem:[%s2916_s3 + $0x70] sm:$0xff] }
 0x22d   :  { %v645_v51 = vrot.slane %v644_v50, 2 }
 0x22f   :  { %v646_v53 = vadd.f32 %v645_v51, %v644_v50  ;;  %v892_v50 = vld [vmem:[%s2916_s3 + $0x78] sm:$0xff] }
 0x230   :  { %v2153_v51 = vpack.c.bf16 %v892_v50, %v891_v47 }
 0x231   :  { %v647_v54 = vrot.slane %v646_v53, 1 }
 0x233   :  { %v648_v56 = vadd.f32 %v647_v54, %v646_v53  ;;  %v1419_v53 = vld [vmem:[%s2916_s3 + $0x80] sm:$0xff]  ;;  %v1420_v54 = vld [vmem:[%s2916_s3 + $0x88] sm:$0xff] }
 0x235   :  { %1776 = vmatmul.mubr.f32.vlgmr.msra.gmra.mrb[4].mxu1 %v648_v56  ;;  %v2157_v56 = vpack.c.bf16 %v1420_v54, %v1419_v53  ;;  %v1425_v54 = vld [vmem:[%s2916_s3 + $0xb0] sm:$0xff] }
 0x236   :  { %2128 = vmatpush3.bf16.msra.mxu1 %v2125_v38  ;;  %v821_v38 = vsub.s32 1, %v2426_v1 }
 0x237   :  { %2130 = vmatprep.subr.bf16.mxu1 %v2129_v60 }
 0x23a   :  { %2132 = vmatpush3.bf16.msra.mxu1 %v2129_v60 }
 0x23b   :  { %2134 = vmatprep.subr.bf16.mxu1 %v2133_v27 }
 0x23e   :  { %2136 = vmatpush3.bf16.msra.mxu1 %v2133_v27 }
 0x23f   :  { %2138 = vmatprep.subr.bf16.mxu1 %v2137_v31 }
 0x242   :  { %2140 = vmatpush3.bf16.msra.mxu1 %v2137_v31 }
 0x308   :  { %v715_v61 = vpop.f32.mrb[4].mxu1 }
 0x309   :  { %v722_v63 = vrot.slane %v715_v61, %v2622_v3  ;;  %v1777_v0 = vpop.f32.mrb[5].mxu1 }
 0x30a   :  { %v830_v0 = vrot.slane %v2627_v4, %v829_v57  ;;  %v1430_v57 = vld [vmem:[%s2916_s3 + $0xd8] sm:$0xff] }
 0x30b   :  { %v2648_v5 = vsub.f32 %v636_v32, %v722_v63  ;;  %v2650_v6 = vsub.f32 %v637_v22, %v722_v63  ;;  %v2652_v7 = vsub.f32 %v638_v44, %v722_v63  ;;  %v2654_v8 = vsub.f32 %v639_v39, %v722_v63  ;;  %v885_v22 = vld [vmem:[%s2916_s3 + $0x40] sm:$0xff]  ;;  %v886_v32 = vld [vmem:[%s2916_s3 + $0x48] sm:$0xff]  ;;  %v888_v39 = vld [vmem:[%s2916_s3 + $0x58] sm:$0xff] }
 0x30c   :  { %v2141_v34 = vpack.c.bf16 %v886_v32, %v885_v22  ;;  %v2145_v40 = vpack.c.bf16 %v888_v39, %v887_v12  ;;  %v889_v44 = vld [vmem:[%s2916_s3 + $0x60] sm:$0xff]  ;;  %v822_v63 = vrot.slane %v2627_v4, %v821_v38  ;;  %v1429_v38 = vld [vmem:[%s2916_s3 + $0xd0] sm:$0xff] }
 0x30d   :  { %v727_v9 = vmul.f32 %v2648_v5, %v2648_v5  ;;  %v728_v10 = vmul.f32 %v2650_v6, %v2650_v6  ;;  %v729_v13 = vmul.f32 %v2652_v7, %v2652_v7  ;;  %v730_v16 = vmul.f32 %v2654_v8, %v2654_v8 }
 0x30e   :  { %2142 = vmatprep.subr.bf16.mxu1 %v2141_v34  ;;  %v2149_v48 = vpack.c.bf16 %v890_v45, %v889_v44  ;;  %v1423_v44 = vld [vmem:[%s2916_s3 + $0xa0] sm:$0xff]  ;;  %v1424_v45 = vld [vmem:[%s2916_s3 + $0xa8] sm:$0xff] }
 0x30f   :  { %v731_v15 = vadd.f32 %v728_v10, %v727_v9  ;;  %2144 = vmatpush3.bf16.msra.mxu1 %v2141_v34 }
 0x310   :  { %2146 = vmatprep.subr.bf16.mxu1 %v2145_v40 }
 0x311   :  { %v732_v17 = vadd.f32 %v731_v15, %v729_v13 }
 0x313   :  { %v733_v18 = vadd.f32 %v732_v17, %v730_v16  ;;  %2148 = vmatpush3.bf16.msra.mxu1 %v2145_v40 }
 0x314   :  { %2150 = vmatprep.subr.bf16.mxu1 %v2149_v48 }
 0x315   :  { %v734_v19 = vrot.slane %v733_v18, 4 }
 0x317   :  { %v735_v20 = vadd.f32 %v734_v19, %v733_v18  ;;  %2152 = vmatpush3.bf16.msra.mxu1 %v2149_v48 }
 0x318   :  { %2154 = vmatprep.subr.bf16.mxu1 %v2153_v51 }
 0x319   :  { %v736_v11 = vrot.slane %v735_v20, 2 }
 0x31b   :  { %v737_v21 = vadd.f32 %v736_v11, %v735_v20  ;;  %2156 = vmatpush3.bf16.msra.mxu1 %v2153_v51  ;;  %v2165_v51 = vpack.c.bf16 %v1424_v45, %v1423_v44 }
 0x31c   :  { %2158 = vmatprep.subr.bf16.mxu1 %v2157_v56 }
 0x31d   :  { %v738_v23 = vrot.slane %v737_v21, 1 }
 0x31f   :  { %v739_v24 = vadd.f32 %v738_v23, %v737_v21 }
 0x321   :  { %1811 = vmatmul.mubr.f32.vlgmr.msra.gmra.mrb[4].mxu0 %v739_v24 }
 0x322   :  { %2223 = vmatpush3.bf16.msra.mxu0 %v2568_v42  ;;  %1959 = vmatprep.mubr.msk.f32.mxu0 %vm2365_vm7, %v2366_v59 }
 0x323   :  { %2224 = vmatprep.subr.bf16.mxu0 %v2364_v43 }
 0x326   :  { %2226 = vmatpush3.bf16.msra.mxu0 %v2576_v46 }
 0x327   :  { %2227 = vmatprep.subr.bf16.mxu0 %v2364_v43 }
 0x32a   :  { %2229 = vmatpush3.bf16.msra.mxu0 %v2582_v49 }
 0x32b   :  { %2230 = vmatprep.subr.bf16.mxu0 %v2364_v43 }
 0x32e   :  { %2232 = vmatpush3.bf16.msra.mxu0 %v2588_v52 }
 0x32f   :  { %2233 = vmatprep.subr.bf16.mxu0 %v2364_v43 }
 0x332   :  { %2235 = vmatpush3.bf16.msra.mxu0 %v2594_v55 }
 0x333   :  { %2236 = vmatprep.subr.bf16.mxu0 %v2364_v43 }
 0x336   :  { %2238 = vmatpush3.bf16.msra.mxu0 %v2597_v58 }
 0x337   :  { %2239 = vmatprep.subr.bf16.mxu0 %v2364_v43 }
 0x33a   :  { %2241 = vmatpush3.bf16.msra.mxu0 %v2607_v62 }
 0x33b   :  { %2242 = vmatprep.subr.bf16.mxu0 %v2364_v43 }
 0x33e   :  { %2244 = vmatpush3.bf16.msra.mxu0 %v2613_v2 }
 0x33f   :  { %2245 = vmatprep.subr.bf16.mxu0 %v2364_v43 }
 0x3f4   :  { %v806_v35 = vpop.f32.mrb[4].mxu0 }
 0x3f5   :  { %v807_v36 = vadd.f32 1e-05, %v806_v35  ;;  %v1812_v37 = vpop.f32.mrb[5].mxu0  ;;  %v1426_v35 = vld [vmem:[%s2916_s3 + $0xb8] sm:$0xff] }
 0x3f7   :  { %2308 = vrsqrt.f32 %v807_v36  ;;  %v1428_v36 = vld [vmem:[%s2916_s3 + $0xc8] sm:$0xff] }
 0x3f8   :  { %v2173_v37 = vpack.c.bf16 %v1428_v36, %v1427_v41 }
 0x401   :  { %v2309_v60 = vpop.eup %2308 }
 0x402   :  { %v814_v61 = vrot.slane %v2309_v60, %v2622_v3  ;;  %v2177_v60 = vpack.c.bf16 %v1430_v57, %v1429_v38 }
 0x404   :  { %v815_v9 = vmul.f32 %v814_v61, %v2648_v5  ;;  %v818_v10 = vmul.f32 %v814_v61, %v2654_v8  ;;  %v816_v13 = vmul.f32 %v814_v61, %v2650_v6  ;;  %v817_v15 = vmul.f32 %v814_v61, %v2652_v7  ;;  %v1421_v6 = vld [vmem:[%s2916_s3 + $0x90] sm:$0xff]  ;;  %v1422_v7 = vld [vmem:[%s2916_s3 + $0x98] sm:$0xff]  ;;  %v1431_v61 = vld [vmem:[%s2916_s3 + $0xe0] sm:$0xff] }
 0x405   :  { %v2161_v40 = vpack.c.bf16 %v1422_v7, %v1421_v6  ;;  %v1443_v6 = vld [vmem:[%s2916_s3 + $0x130] sm:$0xff]  ;;  %v1444_v7 = vld [vmem:[%s2916_s3 + $0x138] sm:$0xff] }
 0x406   :  { %v823_v16 = vmul.f32 %v822_v63, %v815_v9  ;;  %v826_v17 = vmul.f32 %v822_v63, %v818_v10  ;;  %v824_v18 = vmul.f32 %v822_v63, %v816_v13  ;;  %v825_v19 = vmul.f32 %v822_v63, %v817_v15  ;;  %v1432_v63 = vld [vmem:[%s2916_s3 + $0xe8] sm:$0xff]  ;;  %v1433_v9 = vld [vmem:[%s2916_s3 + $0xf0] sm:$0xff]  ;;  %v1434_v10 = vld [vmem:[%s2916_s3 + $0xf8] sm:$0xff] }
 0x407   :  { %v2185_v13 = vpack.c.bf16 %v1434_v10, %v1433_v9  ;;  %v1437_v15 = vld [vmem:[%s2916_s3 + $0x100] sm:$0xff] }
 0x408   :  { %v831_v20 = vadd.f32 %v830_v0, %v823_v16  ;;  %v834_v11 = vadd.f32 %v830_v0, %v826_v17  ;;  %v832_v21 = vadd.f32 %v830_v0, %v824_v18  ;;  %v833_v23 = vadd.f32 %v830_v0, %v825_v19  ;;  %v1438_v16 = vld [vmem:[%s2916_s3 + $0x108] sm:$0xff]  ;;  %v1439_v18 = vld [vmem:[%s2916_s3 + $0x110] sm:$0xff]  ;;  %v1440_v19 = vld [vmem:[%s2916_s3 + $0x118] sm:$0xff] }
 0x409   :  { %v2181_v0 = vpack.c.bf16 %v1432_v63, %v1431_v61  ;;  %v2189_v17 = vpack.c.bf16 %v1438_v16, %v1437_v15 }
 0x40a   :  { %v2733_v24 = vmax.f32 %v831_v20, 0.0  ;;  %v2735_v25 = vmax.f32 %v834_v11, 0.0  ;;  %v2737_v26 = vmax.f32 %v832_v21, 0.0  ;;  %v2739_v5 = vmax.f32 %v833_v23, 0.0  ;;  %v1441_v11 = vld [vmem:[%s2916_s3 + $0x120] sm:$0xff]  ;;  %v1442_v21 = vld [vmem:[%s2916_s3 + $0x128] sm:$0xff] }
 0x40b   :  { %v2193_v20 = vpack.c.bf16 %v1440_v19, %v1439_v18  ;;  %v2197_v23 = vpack.c.bf16 %v1442_v21, %v1441_v11  ;;  %v1375_v11 = vsub.s32 4, %v2426_v1  ;;  %v1383_v21 = vsub.s32 5, %v2426_v1 }
 0x40c   :  { %v857_v8 = vrot.slane %v2735_v25, 7  ;;  %v862_v27 = vrot.slane %v2733_v24, 7  ;;  %v863_v29 = vrot.slane %v2737_v26, 7  ;;  %v865_v30 = vrot.slane %v2739_v5, 7 }
 0x40d   :  { %v1063_v31 = vrot.slane %v2733_v24, 1  ;;  %v1064_v22 = vrot.slane %v2737_v26, 1  ;;  %v1066_v32 = vrot.slane %v2739_v5, 1  ;;  %v1068_v34 = vrot.slane %v2735_v25, 1 }
 0x40e   :  { %v872_v12 = vsel %vm148_vm0, %v857_v8, %v862_v27  ;;  %v864_v39 = vsel %vm148_vm0, %v862_v27, %v863_v29  ;;  %v866_v50 = vsel %vm148_vm0, %v863_v29, %v865_v30  ;;  %v867_v53 = vsel %vm148_vm0, %v865_v30, %v857_v8  ;;  %v1445_v27 = vld [vmem:[%s2916_s3 + $0x140] sm:$0xff]  ;;  %v1446_v29 = vld [vmem:[%s2916_s3 + $0x148] sm:$0xff] }
 0x40f   :  { %1845 = vmatprep.mubr.msk.f32.mxu1 %vm2440_vm1, %v872_v12  ;;  %v2768_v47 = vsel %vm371_vm4, %v1064_v22, %v1066_v32  ;;  %v2771_v48 = vsel %vm371_vm4, %v1066_v32, %v1068_v34  ;;  %v2776_v14 = vsel %vm371_vm4, %v1068_v34, %v1063_v31  ;;  %v1065_v8 = vsel %vm371_vm4, %v1063_v31, %v1064_v22  ;;  %v1449_v31 = vld [vmem:[%s2916_s3 + $0x160] sm:$0xff]  ;;  %v1450_v22 = vld [vmem:[%s2916_s3 + $0x168] sm:$0xff]  ;;  %v1451_v34 = vld [vmem:[%s2916_s3 + $0x170] sm:$0xff] }
 0x410   :  { %1846 = vmatmul.mubr.f32.vlgmr.msra.gmra.mrb[6].mxu1 %v864_v39  ;;  %v2213_v32 = vpack.c.bf16 %v1450_v22, %v1449_v31  ;;  %v1452_v12 = vld [vmem:[%s2916_s3 + $0x178] sm:$0xff] }
 0x411   :  { %2160 = vmatpush3.bf16.msra.mxu1 %v2157_v56  ;;  %1848 = vmatprep.mubr.msk.f32.mxu1 %vm2480_vm3, %v866_v50  ;;  %v2169_v56 = vpack.c.bf16 %v1426_v35, %v1425_v54  ;;  %v2217_v39 = vpack.c.bf16 %v1452_v12, %v1451_v34 }
 0x412   :  { %2162 = vmatprep.subr.bf16.mxu1 %v2161_v40 }
 0x414   :  { %1849 = vmatmul.mubr.f32.gmra.mrb[8].mxu1 %v867_v53 }
 0x415   :  { %2164 = vmatpush3.bf16.msra.mxu1 %v2161_v40  ;;  %1883 = vmatprep.mubr.f32.mxu1 %v2733_v24  ;;  %v1447_v24 = vld [vmem:[%s2916_s3 + $0x150] sm:$0xff]  ;;  %v1188_v40 = vsub.s32 3, %v2426_v1 }
 0x416   :  { %2166 = vmatprep.subr.bf16.mxu1 %v2165_v51 }
 0x417   :  { %v1189_v44 = vrot.slane %v2627_v4, %v1188_v40 }
 0x419   :  { %2168 = vmatpush3.bf16.msra.mxu1 %v2165_v51 }
 0x41a   :  { %2170 = vmatprep.subr.bf16.mxu1 %v2169_v56 }
 0x41d   :  { %2172 = vmatpush3.bf16.msra.mxu1 %v2169_v56 }
 0x41e   :  { %2174 = vmatprep.subr.bf16.mxu1 %v2173_v37 }
 0x421   :  { %2176 = vmatpush3.bf16.msra.mxu1 %v2173_v37 }
 0x422   :  { %2178 = vmatprep.subr.bf16.mxu1 %v2177_v60 }
 0x425   :  { %2180 = vmatpush3.bf16.msra.mxu1 %v2177_v60 }
 0x426   :  { %2182 = vmatprep.subr.bf16.mxu1 %v2181_v0 }
 0x429   :  { %2184 = vmatpush3.bf16.msra.mxu1 %v2181_v0 }
 0x42a   :  { %2186 = vmatprep.subr.bf16.mxu1 %v2185_v13 }
 0x42d   :  { %2188 = vmatpush3.bf16.msra.mxu1 %v2185_v13 }
 0x42e   :  { %2190 = vmatprep.subr.bf16.mxu1 %v2189_v17 }
 0x430   :  { %1884 = vmatmul.mubr.f32.vlgmr.msra.gmra.mrb[6].mxu1 %v2737_v26  ;;  %v1448_v26 = vld [vmem:[%s2916_s3 + $0x158] sm:$0xff] }
 0x431   :  { %1886 = vmatprep.mubr.f32.mxu1 %v2739_v5  ;;  %2192 = vmatpush3.bf16.msra.mxu1 %v2189_v17  ;;  %v2201_v5 = vpack.c.bf16 %v1444_v7, %v1443_v6  ;;  %v2209_v30 = vpack.c.bf16 %v1448_v26, %v1447_v24  ;;  %v1376_v6 = vrot.slane %v2627_v4, %v1375_v11 }
 0x432   :  { %2194 = vmatprep.subr.bf16.mxu1 %v2193_v20 }
 0x434   :  { %1887 = vmatmul.mubr.f32.gmra.mrb[8].mxu1 %v2735_v25  ;;  %v2205_v25 = vpack.c.bf16 %v1446_v29, %v1445_v27 }
 0x435   :  { %2196 = vmatpush3.bf16.msra.mxu1 %v2193_v20  ;;  %1921 = vmatprep.mubr.f32.mxu1 %v1065_v8  ;;  %v1384_v8 = vrot.slane %v2627_v4, %v1383_v21 }
 0x436   :  { %2198 = vmatprep.subr.bf16.mxu1 %v2197_v23 }
 0x439   :  { %2200 = vmatpush3.bf16.msra.mxu1 %v2197_v23 }
 0x43a   :  { %2202 = vmatprep.subr.bf16.mxu1 %v2201_v5 }
 0x43d   :  { %2204 = vmatpush3.bf16.msra.mxu1 %v2201_v5 }
 0x43e   :  { %2206 = vmatprep.subr.bf16.mxu1 %v2205_v25 }
 0x441   :  { %2208 = vmatpush3.bf16.msra.mxu1 %v2205_v25 }
 0x442   :  { %2210 = vmatprep.subr.bf16.mxu1 %v2209_v30 }
 0x445   :  { %2212 = vmatpush3.bf16.msra.mxu1 %v2209_v30 }
 0x446   :  { %2214 = vmatprep.subr.bf16.mxu1 %v2213_v32 }
 0x449   :  { %2216 = vmatpush3.bf16.msra.mxu1 %v2213_v32 }
 0x44a   :  { %2218 = vmatprep.subr.bf16.mxu1 %v2217_v39 }
 0x44d   :  { %2220 = vmatpush3.bf16.msra.mxu1 %v2217_v39 }
 0x450   :  { %1922 = vmatmul.mubr.msk.f32.vlgmr.msra.gmra.mrb[6].mxu1 %vm2537_vm5, %v2768_v47 }
 0x451   :  { %1924 = vmatprep.mubr.f32.mxu1 %v2771_v48 }
 0x454   :  { %1925 = vmatmul.mubr.msk.f32.gmra.mrb[8].mxu1 %vm2546_vm6, %v2776_v14 }
 0x523   :  { %v1923_v45 = vpop.f32.mrb[6].mxu1 }
 0x524   :  { %v1163_v50 = vpop.f32.mrb[7].mxu1  ;;  %v1191_v51 = vadd.f32 %v1923_v45, %v1189_v44 }
 0x525   :  { %v1190_v53 = vadd.f32 %v1189_v44, %v1163_v50 }
 0x527   :  { %v1926_v54 = vpop.f32.mrb[8].mxu1  ;;  %v1194_v56 = vadd.f32 %v1191_v51, %v1190_v53 }
 0x528   :  { %v1173_v35 = vpop.f32.mrb[9].mxu1  ;;  %v1193_v28 = vadd.f32 %v1926_v54, %v1189_v44 }
 0x529   :  { %v1192_v41 = vadd.f32 %v1189_v44, %v1173_v35 }
 0x52b   :  { %v1195_v47 = vadd.f32 %v1194_v56, %v1192_v41 }
 0x52d   :  { %v1196_v36 = vadd.f32 %v1195_v47, %v1193_v28 }
 0x52f   :  { %v1197_v48 = vrot.slane %v1196_v36, 4 }
 0x531   :  { %v1198_v37 = vadd.f32 %v1197_v48, %v1196_v36 }
 0x533   :  { %v1199_v38 = vrot.slane %v1198_v37, 2 }
 0x535   :  { %v1200_v33 = vadd.f32 %v1199_v38, %v1198_v37 }
 0x537   :  { %v1201_v14 = vrot.slane %v1200_v33, 1 }
 0x539   :  { %v1202_v57 = vadd.f32 %v1201_v14, %v1200_v33 }
 0x53b   :  { %1960 = vmatmul.mubr.f32.vlgmr.msra.gmra.mrb[6].mxu0 %v1202_v57 }
 0x53c   :  { %2247 = vmatpush3.bf16.msra.mxu0 %v2568_v42  ;;  %1994 = vmatprep.mubr.msk.f32.mxu0 %vm2365_vm7, %v2366_v59 }
 0x53d   :  { %2248 = vmatprep.subr.bf16.mxu0 %v2364_v43 }
 0x540   :  { %2250 = vmatpush3.bf16.msra.mxu0 %v2576_v46 }
 0x541   :  { %2251 = vmatprep.subr.bf16.mxu0 %v2364_v43 }
 0x544   :  { %2253 = vmatpush3.bf16.msra.mxu0 %v2582_v49 }
 0x545   :  { %2254 = vmatprep.subr.bf16.mxu0 %v2364_v43 }
 0x548   :  { %2256 = vmatpush3.bf16.msra.mxu0 %v2588_v52 }
 0x549   :  { %2257 = vmatprep.subr.bf16.mxu0 %v2364_v43 }
 0x54c   :  { %2259 = vmatpush3.bf16.msra.mxu0 %v2594_v55 }
 0x54d   :  { %2260 = vmatprep.subr.bf16.mxu0 %v2364_v43 }
 0x550   :  { %2262 = vmatpush3.bf16.msra.mxu0 %v2597_v58 }
 0x551   :  { %2263 = vmatprep.subr.bf16.mxu0 %v2364_v43 }
 0x554   :  { %2265 = vmatpush3.bf16.msra.mxu0 %v2607_v62 }
 0x555   :  { %2266 = vmatprep.subr.bf16.mxu0 %v2364_v43 }
 0x558   :  { %2268 = vmatpush3.bf16.msra.mxu0 %v2613_v2 }
 0x60e   :  { %v1269_v42 = vpop.f32.mrb[6].mxu0 }
 0x60f   :  { %v1276_v46 = vrot.slane %v1269_v42, %v2622_v3  ;;  %v1961_v49 = vpop.f32.mrb[7].mxu0 }
 0x611   :  { %v1277_v52 = vsub.f32 %v1190_v53, %v1276_v46  ;;  %v1278_v59 = vsub.f32 %v1191_v51, %v1276_v46  ;;  %v1279_v60 = vsub.f32 %v1192_v41, %v1276_v46  ;;  %v1280_v55 = vsub.f32 %v1193_v28, %v1276_v46 }
 0x613   :  { %v1281_v61 = vmul.f32 %v1277_v52, %v1277_v52  ;;  %v1282_v63 = vmul.f32 %v1278_v59, %v1278_v59  ;;  %v1283_v0 = vmul.f32 %v1279_v60, %v1279_v60  ;;  %v1284_v9 = vmul.f32 %v1280_v55, %v1280_v55 }
 0x615   :  { %v1285_v58 = vadd.f32 %v1282_v63, %v1281_v61 }
 0x617   :  { %v1286_v10 = vadd.f32 %v1285_v58, %v1283_v0 }
 0x619   :  { %v1287_v13 = vadd.f32 %v1286_v10, %v1284_v9 }
 0x61b   :  { %v1288_v62 = vrot.slane %v1287_v13, 4 }
 0x61d   :  { %v1289_v15 = vadd.f32 %v1288_v62, %v1287_v13 }
 0x61f   :  { %v1290_v43 = vrot.slane %v1289_v15, 2 }
 0x621   :  { %v1291_v16 = vadd.f32 %v1290_v43, %v1289_v15 }
 0x623   :  { %v1292_v2 = vrot.slane %v1291_v16, 1 }
 0x625   :  { %v1293_v17 = vadd.f32 %v1292_v2, %v1291_v16 }
 0x627   :  { %1995 = vmatmul.mubr.f32.vlgmr.msra.gmra.mrb[8].mxu0 %v1293_v17 }
 0x6fa   :  { %v1360_v18 = vpop.f32.mrb[8].mxu0 }
 0x6fb   :  { %v1361_v19 = vadd.f32 1e-05, %v1360_v18  ;;  %v1996_v20 = vpop.f32.mrb[9].mxu0 }
 0x6fd   :  { %2310 = vrsqrt.f32 %v1361_v19 }
 0x707   :  { %v2311_v23 = vpop.eup %2310 }
 0x708   :  { %v1368_v7 = vrot.slane %v2311_v23, %v2622_v3 }
 0x70a   :  { %v1369_v5 = vmul.f32 %v1368_v7, %v1277_v52  ;;  %v1370_v27 = vmul.f32 %v1368_v7, %v1278_v59  ;;  %v1371_v29 = vmul.f32 %v1368_v7, %v1279_v60  ;;  %v1372_v25 = vmul.f32 %v1368_v7, %v1280_v55 }
 0x70c   :  { %v1377_v24 = vmul.f32 %v1376_v6, %v1369_v5  ;;  %v1378_v26 = vmul.f32 %v1376_v6, %v1370_v27  ;;  %v1379_v30 = vmul.f32 %v1376_v6, %v1371_v29  ;;  %v1380_v31 = vmul.f32 %v1376_v6, %v1372_v25 }
 0x70e   :  { %v1385_v22 = vadd.f32 %v1384_v8, %v1377_v24  ;;  %v1386_v32 = vadd.f32 %v1384_v8, %v1378_v26  ;;  %v1387_v34 = vadd.f32 %v1384_v8, %v1379_v30  ;;  %v1388_v12 = vadd.f32 %v1384_v8, %v1380_v31 }
 0x710   :  { %v1389_v1 = vmax.f32 %v1385_v22, 0.0  ;;  %v1390_v39 = vmax.f32 %v1386_v32, 0.0  ;;  %v1391_v40 = vmax.f32 %v1387_v34, 0.0  ;;  %v1392_v44 = vmax.f32 %v1388_v12, 0.0 }
 0x712   :  { %1393 = vst [vmem:[%s2919_s6] sm:$0xff] %v1389_v1  ;;  %1394 = vst [vmem:[%s2919_s6 + $0x8] sm:$0xff] %v1390_v39 }
 0x713   :  { %1395 = vst [vmem:[%s2919_s6 + $0x10] sm:$0xff] %v1391_v40  ;;  %1396 = vst [vmem:[%s2919_s6 + $0x18] sm:$0xff] %v1392_v44 }
 0x714   :  { %1401 = vsyncpa [#allocation3], 1 }
 0x715   :  { %1402 = vsyncpa [#allocation5], 1 }

</bundles_post_ra>
